<compile_context>
chip_gen: v5e
topology: v5e:2x2
jax: 0.10.0
libtpu: 0.0.40
codegen_flags: <defaults>
</compile_context>

<pallas_src>
import jax
import jax.numpy as jnp
from jax.experimental import pallas as pl
from jax.experimental.pallas import tpu as pltpu


def _pick_tile(total, quantum, max_tile):
    """Largest divisor of `total` that is a multiple of `quantum` and <= max_tile.
    Falls back to `total` (a full-axis block is always a legal BlockSpec)."""
    if total <= max_tile:
        return total
    t = (max_tile // quantum) * quantum
    while t >= quantum:
        if total % t == 0:
            return t
        t -= quantum
    return total


# ----------------------------------------------------------------------------
# ConvTranspose3d with kernel_size == stride == (1, k, k), padding 0.
# ----------------------------------------------------------------------------
def _upconv_kernel(x_ref, w_ref, b_ref, o_ref):
    # x_ref: (1, C_in, S_TILE)      w_ref: (C_out*k*k, C_in)
    # b_ref: (C_out*k*k, 1)         o_ref: (1, C_out*k*k, S_TILE)
    x = x_ref[0].astype(jnp.float32)
    w = w_ref[...].astype(jnp.float32)
    z = jnp.dot(w, x, preferred_element_type=jnp.float32)
    z = z + b_ref[...].astype(jnp.float32)        # bias broadcast along lanes
    o_ref[0] = z.astype(o_ref.dtype)


def conv_transpose_up(x, weight, bias, *, max_s_tile=2048):
    """x: (N, C_in, D, H, W); weight: (C_in, C_out, 1, k, k) (PyTorch layout);
    bias: (C_out,).  Returns (N, C_out, D, H*k, W*k)."""
    N, Ci, D, H, W = x.shape
    wCi, Co, kd, k, k2 = weight.shape
    assert wCi == Ci and kd == 1 and k == k2

    S = D * H * W
    # Matmul matrix (C_out*k*k, C_in); row index = co*k*k + kh*k + kw.
    wm = jnp.transpose(weight[:, :, 0], (1, 2, 3, 0)).reshape(Co * k * k, Ci)
    bcol = jnp.repeat(bias, k * k).reshape(Co * k * k, 1)

    x2 = x.reshape(N, Ci, S)                       # free reshape, lane axis = S
    s_tile = _pick_tile(S, 128, max_s_tile)
    grid = (N, S // s_tile)

    z = pl.pallas_call(
        _upconv_kernel,
        out_shape=jax.ShapeDtypeStruct((N, Co * k * k, S), x.dtype),
        grid_spec=pltpu.PrefetchScalarGridSpec(
            num_scalar_prefetch=0,
            grid=grid,
            in_specs=[
                pl.BlockSpec((1, Ci, s_tile), lambda n, s: (n, 0, s)),       # x
                pl.BlockSpec((Co * k * k, Ci), lambda n, s: (0, 0)),         # weight
                pl.BlockSpec((Co * k * k, 1), lambda n, s: (0, 0)),          # bias
            ],
            out_specs=pl.BlockSpec((1, Co * k * k, s_tile), lambda n, s: (n, 0, s)),
        ),
        compiler_params=pltpu.CompilerParams(
            dimension_semantics=("parallel", "parallel")),
    )(x2, wm, bcol)

    # Pixel-shuffle the (co, kh, kw) rows into the (H*k, W*k) output grid.
    z = z.reshape(N, Co, k, k, D, H, W)
    z = jnp.transpose(z, (0, 1, 4, 5, 2, 6, 3))     # (N, Co, D, H, kh, W, kw)
    return z.reshape(N, Co, D, H * k, W * k)


# ----------------------------------------------------------------------------
# Elementwise sum of same-shaped feature maps (the `out_fmap += fmap` loop).
# ----------------------------------------------------------------------------
def _sum_kernel(*refs):
    *in_refs, o_ref = refs
    acc = in_refs[0][...].astype(jnp.float32)
    for r in in_refs[1:]:
        acc = acc + r[...].astype(jnp.float32)
    o_ref[...] = acc.astype(o_ref.dtype)


def sum_fmaps(tensors, *, max_row_tile=256, max_lane_tile=4096):
    shape = tensors[0].shape
    N, C, D, H, W = shape
    R, L = N * C, D * H * W
    flat = [t.reshape(R, L) for t in tensors]      # free reshape, lane axis = D*H*W
    r_tile = _pick_tile(R, 8, max_row_tile)
    l_tile = _pick_tile(L, 128, max_lane_tile)
    grid = (R // r_tile, L // l_tile)
    spec = pl.BlockSpec((r_tile, l_tile), lambda i, j: (i, j))

    out = pl.pallas_call(
        _sum_kernel,
        out_shape=jax.ShapeDtypeStruct((R, L), tensors[0].dtype),
        grid_spec=pltpu.PrefetchScalarGridSpec(
            num_scalar_prefetch=0,
            grid=grid,
            in_specs=[spec] * len(tensors),
            out_specs=spec,
        ),
        compiler_params=pltpu.CompilerParams(
            dimension_semantics=("parallel", "parallel")),
    )(*flat)
    return out.reshape(shape)


# ----------------------------------------------------------------------------
# Full BiFPN_Head forward.
# ----------------------------------------------------------------------------
def bifpn_head_forward(fmaps, weights, biases):
    """Returns (returned, accumulated):
      * returned    -- what the PyTorch forward returns (`return fmap`, i.e. the
                       LAST upsampled feature map).
      * accumulated -- fmaps[0] + sum(upsampled fmaps); PyTorch writes this
                       in-place into fmaps[0] (observable side effect)."""
    up_fmaps = [conv_transpose_up(f, w, b)
                for f, w, b in zip(fmaps[1:], weights, biases)]
    accumulated = sum_fmaps([fmaps[0]] + up_fmaps)
    return up_fmaps[-1], accumulated


# ----------------------------------------------------------------------------
# Pure-JAX reference mirroring the PyTorch module exactly.
# ----------------------------------------------------------------------------
def _ref_upconv(x, weight, bias):
    Ci, Co, _, k, _ = weight.shape
    N, _, D, H, W = x.shape
    y = jnp.einsum('nidhw,ioyz->nodhywz', x, weight[:, :, 0],
                   precision=jax.lax.Precision.HIGHEST)
    y = y.reshape(N, Co, D, H * k, W * k)
    return y + bias[None, :, None, None, None]


def _ref_bifpn_head(fmaps, weights, biases):
    ups = [_ref_upconv(f, w, b) for f, w, b in zip(fmaps[1:], weights, biases)]
    out = fmaps[0]
    for u in ups:
        out = out + u
    return ups[-1], out        # PyTorch returns the last upsampled map


if __name__ == "__main__":
    key = jax.random.PRNGKey(0)
    min_channels, size = 4, 4
    N, D, H0, W0 = 2, 2, 16, 16

    # Quantize inputs/weights to the bf16 grid so MXU (default precision) and
    # the f32 XLA reference agree to f32 accumulation noise.
    def _q(a):
        return a.astype(jnp.bfloat16).astype(jnp.float32)

    keys = iter(jax.random.split(key, 4 * size))

    fmaps = []
    for i in range(size):
        c = min_channels * 2 ** i
        h = H0 // 2 ** i
        w = W0 // 2 ** i
        fmaps.append(_q(jax.random.normal(next(keys), (N, c, D, h, w), jnp.float32)))

    weights, biases = [], []
    for i in range(size - 1):
        k = 2 ** (i + 1)
        cin = min_channels * 2 ** (i + 1)
        weights.append(_q(0.1 * jax.random.normal(
            next(keys), (cin, min_channels, 1, k, k), jnp.float32)))
        biases.append(_q(0.1 * jax.random.normal(
            next(keys), (min_channels,), jnp.float32)))

    ret, accum = bifpn_head_forward(fmaps, weights, biases)
    ret, accum = jax.block_until_ready((ret, accum))

    ref_ret, ref_accum = _ref_bifpn_head(fmaps, weights, biases)

    assert ret.shape == (N, min_channels, D, H0, W0) and ret.dtype == fmaps[0].dtype
    assert jnp.allclose(ret, ref_ret, atol=1e-4, rtol=1e-4), "mismatch vs reference (returned fmap)"
    assert jnp.allclose(accum, ref_accum, atol=1e-4, rtol=1e-4), "mismatch vs reference (accumulated fmap)"

    print("KERNEL_OK")
</pallas_src>

<mosaic_0001>
module attributes {stable_mosaic.version = 11 : i64} {
  func.func @_upconv_kernel(%arg0: i32, %arg1: i32, %arg2: memref<1x8x128xf32, #tpu.memory_space<vmem>>, %arg3: memref<16x8xf32, #tpu.memory_space<vmem>>, %arg4: memref<16x1xf32, #tpu.memory_space<vmem>>, %arg5: memref<1x16x128xf32, #tpu.memory_space<vmem>>) attributes {dimension_semantics = [#tpu.dimension_semantics<parallel>, #tpu.dimension_semantics<parallel>], iteration_bounds = array<i64: 2, 1>, scalar_prefetch = 0 : i64, scratch_operands = 0 : i64, tpu.core_type = #tpu.core_type<tc>, window_params = [{transform_indices = @transform_0, window_bounds = array<i64: 1, 8, 128>}, {pipeline_mode = #tpu.pipeline_mode<synchronous>, transform_indices = @transform_1, window_bounds = array<i64: 16, 8>}, {pipeline_mode = #tpu.pipeline_mode<synchronous>, transform_indices = @transform_2, window_bounds = array<i64: 16, 1>}, {transform_indices = @transform_3, window_bounds = array<i64: 1, 16, 128>}]} {
    %c0 = arith.constant 0 : index
    %c0_0 = arith.constant 0 : index
    %c0_1 = arith.constant 0 : index
    %0 = vector.load %arg2[%c0, %c0_0, %c0_1] : memref<1x8x128xf32, #tpu.memory_space<vmem>>, vector<1x8x128xf32>
    %1 = vector.shape_cast %0 : vector<1x8x128xf32> to vector<8x128xf32>
    %c0_2 = arith.constant 0 : index
    %c0_3 = arith.constant 0 : index
    %2 = vector.load %arg3[%c0_2, %c0_3] : memref<16x8xf32, #tpu.memory_space<vmem>>, vector<16x8xf32>
    %cst = arith.constant dense<0.000000e+00> : vector<16x128xf32>
    %3 = tpu.matmul %2, %1, %cst {dimension_numbers = #tpu.dot_dimension_numbers<[1], [0], [0], [1], [0, 0, 1, 1], [], []>} : vector<16x8xf32>, vector<8x128xf32>, vector<16x128xf32> -> vector<16x128xf32>
    %c0_4 = arith.constant 0 : index
    %c0_5 = arith.constant 0 : index
    %4 = vector.load %arg4[%c0_4, %c0_5] : memref<16x1xf32, #tpu.memory_space<vmem>>, vector<16x1xf32>
    %5 = vector.broadcast %4 : vector<16x1xf32> to vector<16x128xf32>
    %6 = arith.addf %3, %5 : vector<16x128xf32>
    %c0_6 = arith.constant 0 : index
    %c0_7 = arith.constant 0 : index
    %c0_8 = arith.constant 0 : index
    %7 = vector.load %arg5[%c0_6, %c0_7, %c0_8] : memref<1x16x128xf32, #tpu.memory_space<vmem>>, vector<1x16x128xf32>
    %8 = vector.shape_cast %7 : vector<1x16x128xf32> to vector<16x128xf32>
    %9 = vector.shape_cast %6 : vector<16x128xf32> to vector<1x16x128xf32>
    tpu.vector_store %arg5[%c0_6, %c0_7, %c0_8], %9 {strides = array<i32>} : memref<1x16x128xf32, #tpu.memory_space<vmem>>, vector<1x16x128xf32>,
    return
  }
  func.func @transform_0(%arg0: i32, %arg1: i32) -> (i32, i32, i32) {
    %c0_i32 = arith.constant 0 : i32
    %c0_i32_0 = arith.constant 0 : i32
    return %arg0, %c0_i32, %arg1 : i32, i32, i32
  }
  func.func @transform_1(%arg0: i32, %arg1: i32) -> (i32, i32) {
    %c0_i32 = arith.constant 0 : i32
    %c0_i32_0 = arith.constant 0 : i32
    %c0_i32_1 = arith.constant 0 : i32
    return %c0_i32, %c0_i32_0 : i32, i32
  }
  func.func @transform_2(%arg0: i32, %arg1: i32) -> (i32, i32) {
    %c0_i32 = arith.constant 0 : i32
    %c0_i32_0 = arith.constant 0 : i32
    %c0_i32_1 = arith.constant 0 : i32
    return %c0_i32, %c0_i32_0 : i32, i32
  }
  func.func @transform_3(%arg0: i32, %arg1: i32) -> (i32, i32, i32) {
    %c0_i32 = arith.constant 0 : i32
    %c0_i32_0 = arith.constant 0 : i32
    return %arg0, %c0_i32, %arg1 : i32, i32, i32
  }
}

</mosaic_0001>

<bundles_post_ra>
// kernel: tpu_custom_call.1
= control target key start
LH: loop header
LB: loop body
LE: loop exit
PB: predicated region body
PF: predicated region fallthrough
CT: control target
= control target key end

     0   :  { %8 = vsyncpa [#allocation3], 0  ;;  %s617_s0 = inlined_call_operand.vmem [shape: f32[2,8,128], index: 0, kind: input, shape index: {}]   ;;  %s618_s1 = inlined_call_operand.vmem [shape: f32[16,8], index: 1, kind: input, shape index: {}]   ;;  %s619_s2 = inlined_call_operand.vmem [shape: f32[16,1], index: 2, kind: input, shape index: {}]   ;;  %s620_s3 = inlined_call_operand.hbm [shape: f32[2,16,128], index: 3, kind: output, shape index: {}]  }
   0x1   :  { %10 = vsyncpa [#allocation3 + $0x1], 0  ;;  %s508_s12 = smov 0   ;;  %s510_s13 = smov 0  }
   0x2   :  { %s512_s14 = smov 0   ;;  %s514_s15 = smov 0  }
   0x3   :  { %s516_s16 = smov 0   ;;  %s518_s17 = smov 0  }
   0x4 LB: > { %s330_s18 = sadd.s32 4294967295, %s483_s17   ;;  %s331_s19 = sadd.s32 4294967294, %s483_s17   ;;  %s483_s17 = sphi %s518_s17, %s16_s17   ;;  %s479_s16 = sphi %s516_s16, %s627_s16   ;;  %s475_s15 = sphi %s514_s15, %s626_s15   ;;  %s471_s14 = sphi %s512_s14, %s625_s14   ;;  %s467_s13 = sphi %s510_s13, %s624_s13   ;;  %s463_s12 = sphi %s508_s12, %s623_s12  }
   0x5   : > { %s28_s20 = sadd.s32 1, %s479_s16  ;;  %s107_s21 = sadd.s32 1, %s471_s14 }
   0x6   : > { %p30_p0 = scmp.ge.s32.totalorder %s28_s20, 2  ;;  %p117_p1 = scmp.ne.s32.totalorder %s471_s14, %s467_s13 }
   0x7   : > { %p118_p2 = scmp.eq.s32.totalorder %s330_s18, 1  ;;  %p123_p3 = scmp.ne.s32.totalorder %s467_s13, %s463_s12 }
   0x8   : > { %s629_s20 = smov (%p30_p0, %s28_s20), 0  ;;  %p124_p5 = scmp.eq.s32.totalorder %s331_s19, 1 }
   0x9   : > { %p548_p4 = por %p118_p2, %p117_p1  ;;  %s102_s23 = ssub.s32 %s479_s16, %s629_s20 }
   0xa   : > { %p334_p6 = scmp.ge.s32.totalorder %s483_s17, 1  ;;  %p105_p7 = scmp.eq.s32.totalorder %s102_s23, 0 }
   0xb   : > { %p555_p8 = por %p124_p5, %p123_p3  ;;  %p158_p9 = scmp.lt.s32.totalorder %s483_s17, 3 }
   0xc   : > { %s561_s25 = scalar_select %p105_p7, %s471_s14, %s107_s21  }
   0xd   : > { %p159_p10 = pnand %p334_p6, %p158_p9 }
   0xe   : > { %p184_p11 = scmp.lt.s32.totalorder (!%p159_p10), %s475_s15, 1  ;;  %s181_s18 = sand.u32 (!%p159_p10), 1, %s467_s13  }
   0xf   : > { %162 = sbr.rel (%p159_p10) target bundleno = 159 (0x9f), region = 32  ;;  %s335_s19 = sshll.u32 (!%p159_p10), %s181_s18, 4 }
  0x10   : > { %s344_s21 = sshll.u32 (!%p159_p10), %s475_s15, 4  ;;  %s239_s4 = scalar_lea.sflag (!%p159_p10), [#allocation3], %s181_s18 }
  0x11   : > { %s251_s27 = scalar_lea.hbm (!%p159_p10), %s620_s3, %s344_s21  ;;  %s425_s8 = scalar_lea.hbm (!%p159_p10), %s620_s3, 32 }
  0x12   : > { %s254_s30 = sshll.u32 (!%p159_p10), %s251_s27, 4  ;;  %s255_s30 = int_to_ptr.hbm [resolvable:$true] %s254_s30 }
  0x14   : > { %v194_v0 = vld [vmem:[%s619_s2] sm:$0xff]  ;;  %v485_v1 = vmov 0   ;;  %s185_s28 = scalar_select %p184_p11, %s475_s15, 1  ;;  %vm206_vm0 = vcmask 64512   ;;  %v193_v3 = vld [vmem:[%s618_s1 + $0x8] sm:$0xff] }
  0x15   : > { %404 = vset.pattern.permute.xlu0 %v485_v1  ;;  %v192_v2 = vld [vmem:[%s618_s1] sm:$0xff]  ;;  %v195_v5 = vld [vmem:[%s619_s2 + $0x8] sm:$0xff] }
  0x16   : > { %198 = vperm.xlu0 %404, %v194_v0   ;;  %s336_s29 = sshll.u32 %s185_s28, 3  ;;  %s183_s28 = scalar_lea.vmem [#allocation2], %s335_s19 }
  0x17   : > { %s190_s5 = scalar_lea.vmem %s617_s0, %s336_s29  ;;  %s252_s29 = sshll.u32 %s183_s28, 4  ;;  %s253_s29 = int_to_ptr.vmem [resolvable:$true] %s252_s29 }
  0x18   : > { %v191_v4 = vld [vmem:[%s190_s5] sm:$0xff]  ;;  %s419_s5 = sshra.s32 %s255_s30, 4  ;;  %s420_s5 = int_to_ptr.hbm [resolvable:$true] %s419_s5 }
  0x19   : > { %228 = vmatpush.msra.mxu0 %v191_v4  ;;  %345 = vmatpush.msra.mxu1 %v191_v4  ;;  %s421_s15 = scalar_lea.hbm %s420_s5, 16  ;;  %p426_p1 = scmp.lt.s32.totalorder %s420_s5, %s620_s3 }
  0x1a   : > { %337 = vmatmul.msk.f32.vlgmr.msra.gmra.mxu0 %vm206_vm0, %v192_v2  ;;  %338 = vmatmul.msk.f32.vlgmr.msra.gmra.mxu1 %vm206_vm0, %v193_v3  ;;  %p422_p12 = scmp.ne.s32.totalorder %s420_s5, %s421_s15  ;;  %p427_p2 = scmp.lt.s32.totalorder %s425_s8, %s421_s15 }
  0x1c   : > { %p423_p13 = pnand %p422_p12, %p548_p4  ;;  %p428_p3 = por %p427_p2, %p426_p1 }
  0x1e   : > { %203 = vperm.xlu0 %404, %v195_v5   ;;  %p424_p0 = pneg %p423_p13 }
  0x20   : > { %p429_p5 = pnand %p428_p3, %p424_p0 }
  0x88   : > { %v199_v6 = vpop.permute.xlu0 %198 }
  0x90   : > { %v204_v7 = vpop.permute.xlu0 %203 }
  0x97   : > { %v230_v8 = vpop.f32.mrf.mxu0  ;;  %v233_v9 = vpop.f32.mrf.mxu1 }
  0x98   : > { %v231_v10 = vadd.f32 %v230_v8, %v199_v6  ;;  %v234_v11 = vadd.f32 %v233_v9, %v204_v7 }
  0x9a   : > { %236 = vst [vmem:[%s183_s28] sm:$0xff] %v231_v10 }
  0x9b   : > { %237 = vst [vmem:[%s183_s28 + $0x8] sm:$0xff] %v234_v11 }
  0x9c   : > { %432 = shalt.err (!%p429_p5)
}
  0x9d   : > { %s486_s11 = smov 128   ;;  %s487_s18 = smov 8  }
  0x9e   : > { %346 = dma.vmem_to_hbm [thread:$0]  (%p548_p4), %s253_s29, 256, %s255_s30, %s239_s4, %s486_s11, %s486_s11, %s487_s18  }
  0x9f PF: > { %p352_p6 = scmp.ge.s32.totalorder %s483_s17, 2  ;;  %s269_s19 = sand.u32 1, %s463_s12  }
  0xa0   : > { %s270_s21 = scalar_lea.sflag [#allocation3], %s269_s19 }
  0xa1   : > { %p349_p7 = pnand %p352_p6, %p555_p8 }
  0xa3   : > { %p350_p9 = pneg %p349_p7 }
  0xa5   : > { %458 = dma.done.wait (%p350_p9), %s270_s21, 256  }
  0xa6   : > { %460 = vsyncadd (%p350_p9), %s270_s21, 4294967040  ;;  %s16_s17 = sadd.s32 1, %s483_s17   ;;  %s623_s12 = smov %s467_s13 }
  0xa7   : > { %p13_p10 = scmp.ge.s32.totalorder %s16_s17, 4   ;;  %s624_s13 = smov %s471_s14 }
  0xa8   : > { %s625_s14 = smov %s561_s25  ;;  %s626_s15 = smov %s479_s16 }
  0xa9   : > { %s627_s16 = smov %s629_s20  ;;  %15 = sbr.rel (!%p13_p10) target bundleno = 4 (0x4), region = 67 }
  0xae   :  { %276 = vsyncpa [#allocation3], 1 }
  0xaf   :  { %278 = vsyncpa [#allocation3 + $0x1], 1 }

</bundles_post_ra>
